<compile_context>
chip_gen: v7x
topology: tpu7x:2x2x1
jax: 0.10.0
libtpu: 0.0.40
codegen_flags: <defaults>
</compile_context>

<pallas_src>
import functools

import jax
import jax.numpy as jnp
from jax.experimental import pallas as pl
from jax.experimental.pallas import tpu as pltpu

_LANE = 128
_MIB = 1024 * 1024


def _round_up(x, m):
    return ((x + m - 1) // m) * m


def _round_down(x, m):
    return (x // m) * m


def _vmem_capacity_bytes():
    """Physical VMEM per core; conservative (v7x, 64 MiB) fallback if query fails."""
    try:
        return int(pltpu.get_tpu_info().vmem_capacity_bytes)
    except Exception:
        return 64 * _MIB


def _conv1x1_kernel(x_ref, w_ref, b_ref, o_ref):
    # x_ref: (1, C_in, TN)  w_ref: (C_out, C_in)  b_ref: (C_out, 1)  o_ref: (1, C_out, TN)
    out = jnp.dot(w_ref[...], x_ref[0], preferred_element_type=jnp.float32)
    o_ref[0] = (out + b_ref[...]).astype(o_ref.dtype)


def _conv1x1_kernel_ktiled(x_ref, w_ref, b_ref, o_ref, acc_ref):
    # x_ref: (1, TK, TN)  w_ref: (C_out, TK)  b_ref: (C_out, 1)
    # o_ref: (1, C_out, TN)  acc_ref: (C_out, TN) f32 accumulator (P3 pattern).
    k = pl.program_id(2)

    @pl.when(k == 0)
    def _():
        acc_ref[...] = jnp.zeros_like(acc_ref)

    acc_ref[...] += jnp.dot(w_ref[...], x_ref[0],
                            preferred_element_type=jnp.float32)

    @pl.when(k == pl.num_programs(2) - 1)
    def _():
        o_ref[0] = (acc_ref[...] + b_ref[...]).astype(o_ref.dtype)


def _select_tiles(B, C_in, C_out, HW, x_bytes, out_bytes, vmem_budget):
    """Pick (tk, tn): reduction tile (divides C_in) and lane tile (multiple of 128)."""
    hw_pad = _round_up(HW, _LANE)
    bias_bytes = _round_up(max(C_out, 1), 8) * _LANE * 4  # padded bias block, 1 buffer

    def tn_for(tk, n_k):
        w_buf = 1 if n_k == 1 else 2            # W single-buffered when its index is constant
        fixed = C_out * tk * x_bytes * w_buf + bias_bytes
        per_lane = (2 * tk * x_bytes            # x tile, double-buffered
                    + 2 * C_out * out_bytes     # out tile, double-buffered
                    + (C_out * 4 if n_k > 1 else 0))  # f32 accumulator scratch
        avail = vmem_budget - fixed
        if avail <= per_lane * _LANE:
            return 0
        return _round_down(avail // per_lane, _LANE)

    target_tn = min(hw_pad, 2048)               # HBM roofline plateaus ~512-2048 lanes

    tk = C_in
    tn = tn_for(C_in, 1)
    if tn < target_tn:
        # Tile the reduction axis. tk must divide C_in (no ragged-K garbage) and be a
        # multiple of 128 (it is a lane dim of W and a sublane dim of x).
        best_tk, best_tn = tk, tn
        for d in range(_round_down(C_in - 1, _LANE), 0, -_LANE):
            if C_in % d != 0:
                continue
            t = tn_for(d, -(-C_in // d))
            if t >= target_tn:
                best_tk, best_tn = d, t
                break
            if t > best_tn:
                best_tk, best_tn = d, t
        tk, tn = best_tk, best_tn
        # TODO(synk): a C_in with no multiple-of-128 divisor keeps tk == C_in; a masked
        # ragged-K variant would remove this limit.

    tn = max(_LANE, min(tn, hw_pad, 16384))
    if B == 1 and HW > _LANE:
        # Guarantee >= 2 steps on a parallel axis so both v7x TensorCores get work.
        tn = min(tn, max(_LANE, _round_up(-(-HW // 2), _LANE)))
    return tk, tn


@functools.partial(jax.jit, static_argnames=("compute_dtype",))
def conv1x1_forward(x, w, b, compute_dtype=None):
    """x: [B, C_in, H, W], w: [C_out, C_in], b: [C_out] or None -> [B, C_out, H, W]."""
    B, C_in, H, W_ = x.shape
    C_out = w.shape[0]
    HW = H * W_

    if compute_dtype is not None:
        x = x.astype(compute_dtype)
        w = w.astype(compute_dtype)
    out_dtype = x.dtype
    x_bytes = x.dtype.itemsize
    out_bytes = jnp.dtype(out_dtype).itemsize

    if b is None:
        b = jnp.zeros((C_out,), jnp.float32)

    x3 = x.reshape(B, C_in, HW)                        # lanes = spatial pixels
    b2d = b.astype(jnp.float32).reshape(C_out, 1)      # bias add stays f32

    phys_vmem = _vmem_capacity_bytes()
    vmem_limit = min((phys_vmem * 3) // 4, 56 * _MIB)  # scoped-VMEM limit we request
    budget = vmem_limit - 8 * _MIB                     # budget for our pipelined buffers

    tk, tn = _select_tiles(B, C_in, C_out, HW, x_bytes, out_bytes, budget)
    n_s = -(-HW // tn)
    n_k = -(-C_in // tk)

    cost = pl.CostEstimate(
        flops=2 * B * HW * C_in * C_out,
        bytes_accessed=(B * HW * C_in * x_bytes + B * HW * C_out * out_bytes
                        + C_in * C_out * x_bytes + C_out * 4),
        transcendentals=0,
    )

    if n_k == 1:
        grid = (B, n_s)
        in_specs = [
            pl.BlockSpec((1, C_in, tn), lambda bi, si: (bi, 0, si)),
            pl.BlockSpec((C_out, C_in), lambda bi, si: (0, 0),
                         pipeline_mode=pl.Buffered(1)),      # constant index -> 1 buffer
            pl.BlockSpec((C_out, 1), lambda bi, si: (0, 0),
                         pipeline_mode=pl.Buffered(1)),
        ]
        out_specs = pl.BlockSpec((1, C_out, tn), lambda bi, si: (bi, 0, si))
        scratch_shapes = []
        kernel = _conv1x1_kernel
        dims = ("parallel", "parallel")
    else:
        grid = (B, n_s, n_k)                                  # reduction axis innermost
        in_specs = [
            pl.BlockSpec((1, tk, tn), lambda bi, si, ki: (bi, ki, si)),
            pl.BlockSpec((C_out, tk), lambda bi, si, ki: (0, ki)),
            pl.BlockSpec((C_out, 1), lambda bi, si, ki: (0, 0),
                         pipeline_mode=pl.Buffered(1)),
        ]
        out_specs = pl.BlockSpec((1, C_out, tn), lambda bi, si, ki: (bi, 0, si))
        scratch_shapes = [pltpu.VMEM((C_out, tn), jnp.float32)]
        kernel = _conv1x1_kernel_ktiled
        dims = ("parallel", "parallel", "arbitrary")

    out = pl.pallas_call(
        kernel,
        out_shape=jax.ShapeDtypeStruct((B, C_out, HW), out_dtype),
        grid_spec=pltpu.PrefetchScalarGridSpec(
            num_scalar_prefetch=0,
            grid=grid,
            in_specs=in_specs,
            out_specs=out_specs,
            scratch_shapes=scratch_shapes,
        ),
        compiler_params=pltpu.CompilerParams(
            dimension_semantics=dims,
            vmem_limit_bytes=vmem_limit,
        ),
        cost_estimate=cost,
    )(x3, w, b2d)

    return out.reshape(B, C_out, H, W_)


def init_params(key, c_in, c_out, dtype=jnp.float32):
    """Deterministic init mimicking Conv2d default (uniform +/- 1/sqrt(fan_in))."""
    k_w, k_b = jax.random.split(key)
    bound = 1.0 / (c_in ** 0.5)
    w = jax.random.uniform(k_w, (c_out, c_in), dtype, -bound, bound)
    b = jax.random.uniform(k_b, (c_out,), dtype, -bound, bound)
    return w, b


if __name__ == "__main__":
    key = jax.random.PRNGKey(0)
    B, c_in, c_out, H, W = 2, 4, 8, 16, 16

    k_x, k_p = jax.random.split(key)
    x = jax.random.normal(k_x, (B, c_in, H, W), jnp.float32)
    w, b = init_params(k_p, c_in, c_out)

    out = conv1x1_forward(x, w, b)
    jax.block_until_ready(out)

    # Exact-f32 (VPU) reference; tolerance covers possible bf16-pass MXU rounding
    # of f32 operands on TPU.
    ref = jnp.sum(w[None, :, :, None, None] * x[:, None], axis=2) + b[None, :, None, None]
    assert out.shape == (B, c_out, H, W)
    assert out.dtype == x.dtype
    assert jnp.allclose(out, ref, atol=2e-2, rtol=2e-2)

    # bf16 activation/weight path (bandwidth win on v6e/v7x); looser tolerance.
    out_bf16 = conv1x1_forward(x, w, b, compute_dtype=jnp.bfloat16)
    jax.block_until_ready(out_bf16)
    assert jnp.allclose(out_bf16.astype(jnp.float32), ref, atol=7e-2, rtol=7e-2)

    print("KERNEL_OK")
</pallas_src>

<mosaic_0001>
module attributes {stable_mosaic.version = 11 : i64} {
  func.func @_conv1x1_kernel(%arg0: i32, %arg1: i32, %arg2: memref<1x4x256xf32, #tpu.memory_space<vmem>>, %arg3: memref<8x4xf32, #tpu.memory_space<vmem>>, %arg4: memref<8x1xf32, #tpu.memory_space<vmem>>, %arg5: memref<1x8x256xf32, #tpu.memory_space<vmem>>) attributes {dimension_semantics = [#tpu.dimension_semantics<parallel>, #tpu.dimension_semantics<parallel>], iteration_bounds = array<i64: 2, 1>, scalar_prefetch = 0 : i64, scratch_operands = 0 : i64, tpu.core_type = #tpu.core_type<tc>, window_params = [{transform_indices = @transform_0, window_bounds = array<i64: 1, 4, 256>}, {pipeline_mode = #tpu.pipeline_mode<synchronous>, transform_indices = @transform_1, window_bounds = array<i64: 8, 4>}, {pipeline_mode = #tpu.pipeline_mode<synchronous>, transform_indices = @transform_2, window_bounds = array<i64: 8, 1>}, {transform_indices = @transform_3, window_bounds = array<i64: 1, 8, 256>}]} {
    %c0 = arith.constant 0 : index
    %c0_0 = arith.constant 0 : index
    %0 = vector.load %arg3[%c0, %c0_0] : memref<8x4xf32, #tpu.memory_space<vmem>>, vector<8x4xf32>
    %c0_1 = arith.constant 0 : index
    %c0_2 = arith.constant 0 : index
    %c0_3 = arith.constant 0 : index
    %1 = vector.load %arg2[%c0_1, %c0_2, %c0_3] : memref<1x4x256xf32, #tpu.memory_space<vmem>>, vector<1x4x256xf32>
    %2 = vector.shape_cast %1 : vector<1x4x256xf32> to vector<4x256xf32>
    %cst = arith.constant dense<0.000000e+00> : vector<8x256xf32>
    %3 = tpu.matmul %0, %2, %cst {dimension_numbers = #tpu.dot_dimension_numbers<[1], [0], [0], [1], [0, 0, 1, 1], [], []>} : vector<8x4xf32>, vector<4x256xf32>, vector<8x256xf32> -> vector<8x256xf32>
    %c0_4 = arith.constant 0 : index
    %c0_5 = arith.constant 0 : index
    %4 = vector.load %arg4[%c0_4, %c0_5] : memref<8x1xf32, #tpu.memory_space<vmem>>, vector<8x1xf32>
    %5 = vector.broadcast %4 : vector<8x1xf32> to vector<8x256xf32>
    %6 = arith.addf %3, %5 : vector<8x256xf32>
    %c0_6 = arith.constant 0 : index
    %c0_7 = arith.constant 0 : index
    %c0_8 = arith.constant 0 : index
    %7 = vector.load %arg5[%c0_6, %c0_7, %c0_8] : memref<1x8x256xf32, #tpu.memory_space<vmem>>, vector<1x8x256xf32>
    %8 = vector.shape_cast %7 : vector<1x8x256xf32> to vector<8x256xf32>
    %9 = vector.shape_cast %6 : vector<8x256xf32> to vector<1x8x256xf32>
    tpu.vector_store %arg5[%c0_6, %c0_7, %c0_8], %9 {strides = array<i32>} : memref<1x8x256xf32, #tpu.memory_space<vmem>>, vector<1x8x256xf32>,
    return
  }
  func.func @transform_0(%arg0: i32, %arg1: i32) -> (i32, i32, i32) {
    %c0_i32 = arith.constant 0 : i32
    %c0_i32_0 = arith.constant 0 : i32
    return %arg0, %c0_i32, %arg1 : i32, i32, i32
  }
  func.func @transform_1(%arg0: i32, %arg1: i32) -> (i32, i32) {
    %c0_i32 = arith.constant 0 : i32
    %c0_i32_0 = arith.constant 0 : i32
    %c0_i32_1 = arith.constant 0 : i32
    return %c0_i32, %c0_i32_0 : i32, i32
  }
  func.func @transform_2(%arg0: i32, %arg1: i32) -> (i32, i32) {
    %c0_i32 = arith.constant 0 : i32
    %c0_i32_0 = arith.constant 0 : i32
    %c0_i32_1 = arith.constant 0 : i32
    return %c0_i32, %c0_i32_0 : i32, i32
  }
  func.func @transform_3(%arg0: i32, %arg1: i32) -> (i32, i32, i32) {
    %c0_i32 = arith.constant 0 : i32
    %c0_i32_0 = arith.constant 0 : i32
    return %arg0, %c0_i32, %arg1 : i32, i32, i32
  }
}

</mosaic_0001>

<bundles_post_ra>
// kernel: conv1x1_forward.1
= control target key start
LH: loop header
LB: loop body
LE: loop exit
PB: predicated region body
PF: predicated region fallthrough
CT: control target
= control target key end

     0   :  { %s479_s12 = smov 0   ;;  %s481_s13 = smov 0   ;;  %s518_s0 = inlined_call_operand.vmem [shape: f32[2,4,256], index: 0, kind: input, shape index: {}]   ;;  %s519_s1 = inlined_call_operand.vmem [shape: f32[8,4], index: 1, kind: input, shape index: {}]   ;;  %s520_s2 = inlined_call_operand.vmem [shape: f32[8,1], index: 2, kind: input, shape index: {}]   ;;  %s521_s3 = inlined_call_operand.vmem [shape: f32[2,8,256], index: 3, kind: output, shape index: {}]  }
   0x1   :  { %s483_s14 = smov 0  }
   0x2 LB: > { %s25_s15 = sadd.s32 1, %s451_s13  ;;  %p393_p0 = scmp.ge.s32.totalorder %s455_s14, 1  ;;  %s455_s14 = sphi %s483_s14, %s13_s14   ;;  %s451_s13 = sphi %s481_s13, %s523_s13   ;;  %s447_s12 = sphi %s479_s12, %s522_s12  }
   0x3   : > { %p27_p1 = scmp.ge.s32.totalorder %s25_s15, 2  ;;  %p158_p2 = scmp.lt.s32.totalorder %s455_s14, 3 }
   0x5   : > { %s525_s15 = smov (%p27_p1, %s25_s15), 0  ;;  %p159_p3 = pnand %p393_p0, %p158_p2 }
   0x6   : > { %p191_p4 = scmp.lt.s32.totalorder (!%p159_p3), %s447_s12, 1  ;;  %v457_v0 = vmov (!%p159_p3), 0.0   ;;  %v458_v1 = vmov (!%p159_p3), 0   ;;  %v212_v2 = vld [vmem:[%s520_s2] sm:$0xff] (!%p159_p3)  ;;  %vm224_vm0 = vcmask (!%p159_p3), 1043456   ;;  %vm220_vm1 = vcmask (!%p159_p3), 31744  }
   0x7   : > { %162 = sbr.rel (%p159_p3) target bundleno = 238 (0xee), region = 32  ;;  %293 = vmatprep.mubr.f32.mxu0 (!%p159_p3), %v457_v0  ;;  %431 = vset.pattern.permute.xlu0 (!%p159_p3), %v458_v1  ;;  %v210_v5 = vld [vmem:[%s519_s1] sm:$0xff] (!%p159_p3) }
   0x8   : > { %215 = vperm.xlu0 (!%p159_p3), %431, %v212_v2  }
   0xe   : > { %s527_s12 = smov (!%p191_p4, %s447_s12), 1 }
   0xf   : > { %s403_s18 = sshll.u32 %s527_s12, 3  ;;  %s404_s24 = sshll.u32 %s527_s12, 4 }
  0x10   : > { %s198_s21 = scalar_lea.vmem %s518_s0, %s403_s18  ;;  %s208_s27 = scalar_lea.vmem %s521_s3, %s404_s24 }
  0x11   : > { %v211_v3 = vld [vmem:[%s198_s21] sm:$0xff] }
  0x12   : > { %v219_v4 = vcombine.high %v211_v3, %v211_v3 }
  0x14   : > { %398 = vmatprep.subr.msk.mxu0 %vm224_vm0, %v219_v4 }
  0x15   : > { %399 = vmatpush1.msk.msra.mxu0 %vm224_vm0, %v211_v3 }
  0x16   : > { %400 = vmatmul.mubr.msk.f32.vlgmr.msra.gmra.mrb[0].mxu0 %vm220_vm1, %v210_v5 }
  0x87   : > { %v216_v6 = vpop.permute.xlu0 %215 }
  0xe9   : > { %v295_v7 = vpop.f32.mrb[0].mxu0 }
  0xea   : > { %v296_v8 = vadd.f32 %v295_v7, %v216_v6  ;;  %v297_v9 = vpop.f32.mrb[1].mxu0 }
  0xeb   : > { %v298_v10 = vadd.f32 %v297_v9, %v216_v6 }
  0xec   : > { %300 = vst [vmem:[%s208_s27] sm:$0xff] %v296_v8 }
  0xed   : > { %301 = vst [vmem:[%s208_s27 + $0x8] sm:$0xff] %v298_v10 }
  0xee PF: > { %s13_s14 = sadd.s32 1, %s455_s14   ;;  %s522_s12 = smov %s451_s13 }
  0xef   : > { %p10_p5 = scmp.ge.s32.totalorder %s13_s14, 4   ;;  %s523_s13 = smov %s525_s15 }
  0xf1   :  { %12 = sbr.rel (!%p10_p5) target bundleno = 2 (0x2), region = 62 }

</bundles_post_ra>
